<compile_context>
chip_gen: v5e
topology: v5e:2x2
jax: 0.10.0
libtpu: 0.0.40
codegen_flags: <defaults>
</compile_context>

<pallas_src>
import jax
import jax.numpy as jnp
from jax import lax
from jax.experimental import pallas as pl
from jax.experimental.pallas import tpu as pltpu


_NEG_BIG = -1e30   # large negative instead of -inf (NaN-safe under exp / max arithmetic)


def _vmem_limit_bytes():
    # ~15% headroom below physical VMEM (64 MiB/TC on v7x, 128 MiB on v5e/v6e).
    try:
        return int(pltpu.get_tpu_info().vmem_capacity_bytes * 0.85)
    except Exception:
        return 64 * 1024 * 1024


def _spec(block_shape, index_map, *, buffers=None):
    """BlockSpec helper; buffers=1 single-buffers constant-index operands (weights / bias)."""
    if buffers is None:
        return pl.BlockSpec(block_shape, index_map)
    try:
        return pl.BlockSpec(block_shape, index_map, pipeline_mode=pl.Buffered(buffers))
    except (AttributeError, TypeError):          # older JAX without pipeline_mode support
        return pl.BlockSpec(block_shape, index_map)


# ---------------------------------------------------------------------------
# Kernel 1: fused QKV projection, writing q/k/v directly in head-major layout
# ---------------------------------------------------------------------------
def _qkv_proj_kernel(x_ref, w_ref, q_ref, k_ref, v_ref):
    # x block: (1, block_t, C); w: (C, 3C) in MXU dtype (Wq columns pre-scaled by C**-0.5).
    H, D = q_ref.shape[1], q_ref.shape[3]
    C = H * D
    x = x_ref[0].astype(w_ref.dtype)
    y = jnp.dot(x, w_ref[...], preferred_element_type=jnp.float32)      # (block_t, 3C), f32 acc
    y = y.astype(q_ref.dtype)
    # Head-major store: static lane slices ride the store/XLU slots and hide under the matmul;
    # this removes the wrapper-side reshape + three HBM transposes.
    for h in range(H):
        q_ref[0, h] = y[:, h * D:(h + 1) * D]
        k_ref[0, h] = y[:, C + h * D:C + (h + 1) * D]
        v_ref[0, h] = y[:, 2 * C + h * D:2 * C + (h + 1) * D]


def _qkv_projection(x, wqkv, n_heads, head_size, block_t):
    B, T, C = x.shape
    H, D = n_heads, head_size
    qkv_shape = jax.ShapeDtypeStruct((B, H, T, D), wqkv.dtype)
    out_spec = pl.BlockSpec((1, H, block_t, D), lambda b, t: (b, 0, t, 0))
    return pl.pallas_call(
        _qkv_proj_kernel,
        out_shape=(qkv_shape, qkv_shape, qkv_shape),
        grid_spec=pltpu.PrefetchScalarGridSpec(
            num_scalar_prefetch=0,
            grid=(B, T // block_t),
            in_specs=[
                pl.BlockSpec((1, block_t, C), lambda b, t: (b, t, 0)),
                _spec((C, 3 * C), lambda b, t: (0, 0), buffers=1),     # constant-index weight
            ],
            out_specs=[out_spec, out_spec, out_spec],
        ),
        compiler_params=pltpu.CompilerParams(
            dimension_semantics=("parallel", "parallel"),
            vmem_limit_bytes=_vmem_limit_bytes()),
    )(x, wqkv)


# ---------------------------------------------------------------------------
# Kernel 2: causal attention (K/V VMEM-resident per batch) + fused fc projection
# ---------------------------------------------------------------------------
def _online_softmax_step(q, k, v, m_prev, l_prev, acc_prev, mask=None):
    # q/k/v: (H, blk, D) in MXU dtype; running stats in f32.
    s = jnp.einsum('htd,hsd->hts', q, k, preferred_element_type=jnp.float32)   # (H, blk, blk)
    if mask is not None:
        s = jnp.where(mask, s, _NEG_BIG)
    m_new = jnp.maximum(m_prev, jnp.max(s, axis=-1, keepdims=True))
    alpha = jnp.exp(m_prev - m_new)
    p = jnp.exp(s - m_new)                                                     # f32 softmax math
    l_new = alpha * l_prev + jnp.sum(p, axis=-1, keepdims=True)
    acc_new = alpha * acc_prev + jnp.einsum(
        'hts,hsd->htd', p.astype(v.dtype), v, preferred_element_type=jnp.float32)
    return m_new, l_new, acc_new


def _mha_kernel(q_ref, k_ref, v_ref, wfc_ref, bfc_ref, o_ref):
    qi = pl.program_id(1)
    _, H, block, D = q_ref.shape            # block_q == block_k == block (asserted in wrapper)

    q = q_ref[0]                            # (H, block, D); softmax scale folded into Wq

    m0 = jnp.full((H, block, 1), _NEG_BIG, jnp.float32)
    l0 = jnp.zeros((H, block, 1), jnp.float32)
    acc0 = jnp.zeros((H, block, D), jnp.float32)

    def kv_block(i):
        off = pl.multiple_of(i * block, block)
        k = k_ref[0, :, pl.ds(off, block), :]        # slice the VMEM-resident K/V
        v = v_ref[0, :, pl.ds(off, block), :]
        return k, v

    # 1) Fully-below-diagonal kv blocks: no masking, trip count bounded by the causal limit.
    def body(i, carry):
        k, v = kv_block(i)
        return _online_softmax_step(q, k, v, *carry)

    m, l, acc = lax.fori_loop(0, qi, body, (m0, l0, acc0))

    # 2) Diagonal block: the only block needing a mask; the pattern is a static lower triangle.
    rows = lax.broadcasted_iota(jnp.int32, (block, block), 0)
    cols = lax.broadcasted_iota(jnp.int32, (block, block), 1)
    k, v = kv_block(qi)
    m, l, acc = _online_softmax_step(q, k, v, m, l, acc, mask=(cols <= rows)[None])

    # 3) Finalize: exact normalization + fused output projection (+ bias).
    ctx = (acc / l).astype(wfc_ref.dtype)                               # (H, block, D)
    head_out = jnp.einsum('htd,hdc->htc', ctx, wfc_ref[...],
                          preferred_element_type=jnp.float32)           # (H, block, C)
    o_ref[0] = (jnp.sum(head_out, axis=0) + bfc_ref[...]).astype(o_ref.dtype)


# ---------------------------------------------------------------------------
# Wrapper
# ---------------------------------------------------------------------------
def prepare_params(wq, wk, wv, wfc, bfc, *, n_heads, head_size, mxu_dtype=jnp.bfloat16):
    """One-time parameter prep (hoisted out of the forward pass).

    wq/wk/wv/wfc: (C, C), laid out so y = x @ W.  bfc: (1, C).
    Folds the module's C**-0.5 softmax scale into Wq, fuses the QKV weights, reshapes the fc
    weight into per-head (H, D, C) slices, and casts matmul operands to the MXU dtype.
    """
    C = wq.shape[0]
    H, D = n_heads, head_size
    assert H * D == C, "n_heads * head_size must equal n_embd"
    scale = C ** (-0.5)                                  # PyTorch module scales by n_embd**-0.5
    wqkv = jnp.concatenate([wq * scale, wk, wv], axis=1).astype(mxu_dtype)   # (C, 3C)
    wfc_heads = wfc.reshape(H, D, C).astype(mxu_dtype)                       # (H, D, C)
    return wqkv, wfc_heads, bfc.astype(jnp.float32)


def multi_head_forward(x, wqkv, wfc_heads, bfc, *, n_heads, head_size,
                       block_q=None, block_t=None):
    """Eval-mode forward of Multi_head.  x: (B, T, C) f32 -> (B, T, C) f32."""
    B, T, C = x.shape
    H, D = n_heads, head_size
    assert H * D == C

    # 256 fills the 256-wide MXU on v6e/v7x (and is fine for v5e's 128-wide MXU); shrink only
    # if the per-batch resident K/V gets VMEM-tight (v7x: 64 MiB/TC).
    block = block_q or min(T, 256)
    block_t = block_t or min(T, 512)
    assert T % block == 0 and block % 8 == 0
    assert T % block_t == 0 and block_t % 8 == 0

    # Fused QKV projection; outputs are head-major (B, H, T, D) in the MXU dtype.
    q, k, v = _qkv_projection(x, wqkv, H, D, block_t)

    num_q = T // block

    return pl.pallas_call(
        _mha_kernel,
        out_shape=jax.ShapeDtypeStruct((B, T, C), x.dtype),
        grid_spec=pltpu.PrefetchScalarGridSpec(
            num_scalar_prefetch=0,
            grid=(B, num_q),
            in_specs=[
                pl.BlockSpec((1, H, block, D), lambda b, qi: (b, 0, qi, 0)),   # q tile
                pl.BlockSpec((1, H, T, D), lambda b, qi: (b, 0, 0, 0)),        # K: resident/batch
                pl.BlockSpec((1, H, T, D), lambda b, qi: (b, 0, 0, 0)),        # V: resident/batch
                _spec((H, D, C), lambda b, qi: (0, 0, 0), buffers=1),          # fc weight
                _spec((1, C), lambda b, qi: (0, 0), buffers=1),                # fc bias
            ],
            out_specs=pl.BlockSpec((1, block, C), lambda b, qi: (b, qi, 0)),
        ),
        compiler_params=pltpu.CompilerParams(
            dimension_semantics=("parallel", "parallel"),
            vmem_limit_bytes=_vmem_limit_bytes()),
    )(q, k, v, wfc_heads, bfc)


# ---------------------------------------------------------------------------
# Pure-JAX reference (matches the PyTorch module, eval mode)
# ---------------------------------------------------------------------------
def _reference(x, wk, wq, wv, wfc, bfc, *, n_heads, head_size):
    B, T, C = x.shape
    k = x @ wk
    q = x @ wq
    v = x @ wv
    scale = C ** (-0.5)
    mask = jnp.tril(jnp.ones((T, T), dtype=bool))
    outs = []
    for h in range(n_heads):
        lo, hi = h * head_size, (h + 1) * head_size
        w = (q[..., lo:hi] @ jnp.swapaxes(k[..., lo:hi], -1, -2)) * scale
        w = jnp.where(mask, w, -jnp.inf)
        w = jax.nn.softmax(w, axis=-1)
        outs.append(w @ v[..., lo:hi])
    return jnp.concatenate(outs, axis=-1) @ wfc + bfc


if __name__ == "__main__":
    # Small shapes consistent with the module: n_heads * head_size == n_embd.
    B, T, C = 2, 16, 32
    n_heads, head_size = 4, 8

    key = jax.random.PRNGKey(0)
    kx, kk, kq, kv_, kw, kb = jax.random.split(key, 6)

    x = jax.random.normal(kx, (B, T, C), dtype=jnp.float32)
    sw = 1.0 / jnp.sqrt(C)
    wk = jax.random.normal(kk, (C, C), dtype=jnp.float32) * sw
    wq = jax.random.normal(kq, (C, C), dtype=jnp.float32) * sw
    wv = jax.random.normal(kv_, (C, C), dtype=jnp.float32) * sw
    wfc = jax.random.normal(kw, (C, C), dtype=jnp.float32) * sw
    bfc = jax.random.normal(kb, (1, C), dtype=jnp.float32) * 0.1

    ref = _reference(x, wk, wq, wv, wfc, bfc, n_heads=n_heads, head_size=head_size)

    # block_q/block_t = 8 so the toy T=16 exercises a tiled projection, the in-kernel causal
    # kv loop (0 and 1 below-diagonal blocks), and the diagonal-block mask path.

    # 1) Exact-arithmetic path (f32 MXU operands): tight structural check.
    params_f32 = prepare_params(wq, wk, wv, wfc, bfc, n_heads=n_heads,
                                head_size=head_size, mxu_dtype=jnp.float32)
    out_f32 = multi_head_forward(x, *params_f32, n_heads=n_heads, head_size=head_size,
                                 block_q=8, block_t=8)
    out_f32 = jax.block_until_ready(out_f32)
    assert out_f32.shape == (B, T, C)
    assert jnp.allclose(out_f32, ref, atol=1e-4, rtol=1e-4), "f32 path mismatch vs reference"

    # 2) Production path (bf16 MXU operands, f32 accumulation): tolerance sized for the
    #    expected bf16 operand quantization (~0.4% relative).
    params_bf16 = prepare_params(wq, wk, wv, wfc, bfc, n_heads=n_heads,
                                 head_size=head_size, mxu_dtype=jnp.bfloat16)
    out_bf16 = multi_head_forward(x, *params_bf16, n_heads=n_heads, head_size=head_size,
                                  block_q=8, block_t=8)
    out_bf16 = jax.block_until_ready(out_bf16)
    assert jnp.allclose(out_bf16, ref, atol=3e-2, rtol=3e-2), "bf16 path mismatch vs reference"

    print("KERNEL_OK")
</pallas_src>

<mosaic_0001>
module attributes {stable_mosaic.version = 11 : i64} {
  func.func @_qkv_proj_kernel(%arg0: i32, %arg1: i32, %arg2: memref<1x8x32xf32, #tpu.memory_space<vmem>>, %arg3: memref<32x96xf32, #tpu.memory_space<vmem>>, %arg4: memref<1x4x8x8xf32, #tpu.memory_space<vmem>>, %arg5: memref<1x4x8x8xf32, #tpu.memory_space<vmem>>, %arg6: memref<1x4x8x8xf32, #tpu.memory_space<vmem>>) attributes {dimension_semantics = [#tpu.dimension_semantics<parallel>, #tpu.dimension_semantics<parallel>], iteration_bounds = array<i64: 2, 2>, scalar_prefetch = 0 : i64, scratch_operands = 0 : i64, tpu.core_type = #tpu.core_type<tc>, window_params = [{transform_indices = @transform_0, window_bounds = array<i64: 1, 8, 32>}, {pipeline_mode = #tpu.pipeline_mode<synchronous>, transform_indices = @transform_1, window_bounds = array<i64: 32, 96>}, {transform_indices = @transform_2, window_bounds = array<i64: 1, 4, 8, 8>}, {transform_indices = @transform_3, window_bounds = array<i64: 1, 4, 8, 8>}, {transform_indices = @transform_4, window_bounds = array<i64: 1, 4, 8, 8>}]} {
    %c0 = arith.constant 0 : index
    %c0_0 = arith.constant 0 : index
    %c0_1 = arith.constant 0 : index
    %0 = vector.load %arg2[%c0, %c0_0, %c0_1] : memref<1x8x32xf32, #tpu.memory_space<vmem>>, vector<1x8x32xf32>
    %1 = vector.shape_cast %0 : vector<1x8x32xf32> to vector<8x32xf32>
    %c0_2 = arith.constant 0 : index
    %c0_3 = arith.constant 0 : index
    %2 = vector.load %arg3[%c0_2, %c0_3] : memref<32x96xf32, #tpu.memory_space<vmem>>, vector<32x96xf32>
    %cst = arith.constant dense<0.000000e+00> : vector<8x96xf32>
    %3 = tpu.matmul %1, %2, %cst {dimension_numbers = #tpu.dot_dimension_numbers<[1], [0], [0], [1], [0, 0, 1, 1], [], []>} : vector<8x32xf32>, vector<32x96xf32>, vector<8x96xf32> -> vector<8x96xf32>
    %4 = vector.extract_strided_slice %3 {offsets = [0, 0], sizes = [8, 8], strides = [1, 1]} : vector<8x96xf32> to vector<8x8xf32>
    %c0_4 = arith.constant 0 : index
    %c0_5 = arith.constant 0 : index
    %c0_6 = arith.constant 0 : index
    %c0_7 = arith.constant 0 : index
    %5 = vector.load %arg4[%c0_4, %c0_5, %c0_6, %c0_7] : memref<1x4x8x8xf32, #tpu.memory_space<vmem>>, vector<1x1x8x8xf32>
    %6 = vector.shape_cast %5 : vector<1x1x8x8xf32> to vector<8x8xf32>
    %7 = vector.shape_cast %4 : vector<8x8xf32> to vector<1x1x8x8xf32>
    tpu.vector_store %arg4[%c0_4, %c0_5, %c0_6, %c0_7], %7 {strides = array<i32>} : memref<1x4x8x8xf32, #tpu.memory_space<vmem>>, vector<1x1x8x8xf32>,
    %8 = vector.extract_strided_slice %3 {offsets = [0, 32], sizes = [8, 8], strides = [1, 1]} : vector<8x96xf32> to vector<8x8xf32>
    %c0_8 = arith.constant 0 : index
    %c0_9 = arith.constant 0 : index
    %c0_10 = arith.constant 0 : index
    %c0_11 = arith.constant 0 : index
    %9 = vector.load %arg5[%c0_8, %c0_9, %c0_10, %c0_11] : memref<1x4x8x8xf32, #tpu.memory_space<vmem>>, vector<1x1x8x8xf32>
    %10 = vector.shape_cast %9 : vector<1x1x8x8xf32> to vector<8x8xf32>
    %11 = vector.shape_cast %8 : vector<8x8xf32> to vector<1x1x8x8xf32>
    tpu.vector_store %arg5[%c0_8, %c0_9, %c0_10, %c0_11], %11 {strides = array<i32>} : memref<1x4x8x8xf32, #tpu.memory_space<vmem>>, vector<1x1x8x8xf32>,
    %12 = vector.extract_strided_slice %3 {offsets = [0, 64], sizes = [8, 8], strides = [1, 1]} : vector<8x96xf32> to vector<8x8xf32>
    %c0_12 = arith.constant 0 : index
    %c0_13 = arith.constant 0 : index
    %c0_14 = arith.constant 0 : index
    %c0_15 = arith.constant 0 : index
    %13 = vector.load %arg6[%c0_12, %c0_13, %c0_14, %c0_15] : memref<1x4x8x8xf32, #tpu.memory_space<vmem>>, vector<1x1x8x8xf32>
    %14 = vector.shape_cast %13 : vector<1x1x8x8xf32> to vector<8x8xf32>
    %15 = vector.shape_cast %12 : vector<8x8xf32> to vector<1x1x8x8xf32>
    tpu.vector_store %arg6[%c0_12, %c0_13, %c0_14, %c0_15], %15 {strides = array<i32>} : memref<1x4x8x8xf32, #tpu.memory_space<vmem>>, vector<1x1x8x8xf32>,
    %16 = vector.extract_strided_slice %3 {offsets = [0, 8], sizes = [8, 8], strides = [1, 1]} : vector<8x96xf32> to vector<8x8xf32>
    %c0_16 = arith.constant 0 : index
    %c1 = arith.constant 1 : index
    %c0_17 = arith.constant 0 : index
    %c0_18 = arith.constant 0 : index
    %17 = vector.load %arg4[%c0_16, %c1, %c0_17, %c0_18] : memref<1x4x8x8xf32, #tpu.memory_space<vmem>>, vector<1x1x8x8xf32>
    %18 = vector.shape_cast %17 : vector<1x1x8x8xf32> to vector<8x8xf32>
    %19 = vector.shape_cast %16 : vector<8x8xf32> to vector<1x1x8x8xf32>
    tpu.vector_store %arg4[%c0_16, %c1, %c0_17, %c0_18], %19 {strides = array<i32>} : memref<1x4x8x8xf32, #tpu.memory_space<vmem>>, vector<1x1x8x8xf32>,
    %20 = vector.extract_strided_slice %3 {offsets = [0, 40], sizes = [8, 8], strides = [1, 1]} : vector<8x96xf32> to vector<8x8xf32>
    %c0_19 = arith.constant 0 : index
    %c1_20 = arith.constant 1 : index
    %c0_21 = arith.constant 0 : index
    %c0_22 = arith.constant 0 : index
    %21 = vector.load %arg5[%c0_19, %c1_20, %c0_21, %c0_22] : memref<1x4x8x8xf32, #tpu.memory_space<vmem>>, vector<1x1x8x8xf32>
    %22 = vector.shape_cast %21 : vector<1x1x8x8xf32> to vector<8x8xf32>
    %23 = vector.shape_cast %20 : vector<8x8xf32> to vector<1x1x8x8xf32>
    tpu.vector_store %arg5[%c0_19, %c1_20, %c0_21, %c0_22], %23 {strides = array<i32>} : memref<1x4x8x8xf32, #tpu.memory_space<vmem>>, vector<1x1x8x8xf32>,
    %24 = vector.extract_strided_slice %3 {offsets = [0, 72], sizes = [8, 8], strides = [1, 1]} : vector<8x96xf32> to vector<8x8xf32>
    %c0_23 = arith.constant 0 : index
    %c1_24 = arith.constant 1 : index
    %c0_25 = arith.constant 0 : index
    %c0_26 = arith.constant 0 : index
    %25 = vector.load %arg6[%c0_23, %c1_24, %c0_25, %c0_26] : memref<1x4x8x8xf32, #tpu.memory_space<vmem>>, vector<1x1x8x8xf32>
    %26 = vector.shape_cast %25 : vector<1x1x8x8xf32> to vector<8x8xf32>
    %27 = vector.shape_cast %24 : vector<8x8xf32> to vector<1x1x8x8xf32>
    tpu.vector_store %arg6[%c0_23, %c1_24, %c0_25, %c0_26], %27 {strides = array<i32>} : memref<1x4x8x8xf32, #tpu.memory_space<vmem>>, vector<1x1x8x8xf32>,
    %28 = vector.extract_strided_slice %3 {offsets = [0, 16], sizes = [8, 8], strides = [1, 1]} : vector<8x96xf32> to vector<8x8xf32>
    %c0_27 = arith.constant 0 : index
    %c2 = arith.constant 2 : index
    %c0_28 = arith.constant 0 : index
    %c0_29 = arith.constant 0 : index
    %29 = vector.load %arg4[%c0_27, %c2, %c0_28, %c0_29] : memref<1x4x8x8xf32, #tpu.memory_space<vmem>>, vector<1x1x8x8xf32>
    %30 = vector.shape_cast %29 : vector<1x1x8x8xf32> to vector<8x8xf32>
    %31 = vector.shape_cast %28 : vector<8x8xf32> to vector<1x1x8x8xf32>
    tpu.vector_store %arg4[%c0_27, %c2, %c0_28, %c0_29], %31 {strides = array<i32>} : memref<1x4x8x8xf32, #tpu.memory_space<vmem>>, vector<1x1x8x8xf32>,
    %32 = vector.extract_strided_slice %3 {offsets = [0, 48], sizes = [8, 8], strides = [1, 1]} : vector<8x96xf32> to vector<8x8xf32>
    %c0_30 = arith.constant 0 : index
    %c2_31 = arith.constant 2 : index
    %c0_32 = arith.constant 0 : index
    %c0_33 = arith.constant 0 : index
    %33 = vector.load %arg5[%c0_30, %c2_31, %c0_32, %c0_33] : memref<1x4x8x8xf32, #tpu.memory_space<vmem>>, vector<1x1x8x8xf32>
    %34 = vector.shape_cast %33 : vector<1x1x8x8xf32> to vector<8x8xf32>
    %35 = vector.shape_cast %32 : vector<8x8xf32> to vector<1x1x8x8xf32>
    tpu.vector_store %arg5[%c0_30, %c2_31, %c0_32, %c0_33], %35 {strides = array<i32>} : memref<1x4x8x8xf32, #tpu.memory_space<vmem>>, vector<1x1x8x8xf32>,
    %36 = vector.extract_strided_slice %3 {offsets = [0, 80], sizes = [8, 8], strides = [1, 1]} : vector<8x96xf32> to vector<8x8xf32>
    %c0_34 = arith.constant 0 : index
    %c2_35 = arith.constant 2 : index
    %c0_36 = arith.constant 0 : index
    %c0_37 = arith.constant 0 : index
    %37 = vector.load %arg6[%c0_34, %c2_35, %c0_36, %c0_37] : memref<1x4x8x8xf32, #tpu.memory_space<vmem>>, vector<1x1x8x8xf32>
    %38 = vector.shape_cast %37 : vector<1x1x8x8xf32> to vector<8x8xf32>
    %39 = vector.shape_cast %36 : vector<8x8xf32> to vector<1x1x8x8xf32>
    tpu.vector_store %arg6[%c0_34, %c2_35, %c0_36, %c0_37], %39 {strides = array<i32>} : memref<1x4x8x8xf32, #tpu.memory_space<vmem>>, vector<1x1x8x8xf32>,
    %40 = vector.extract_strided_slice %3 {offsets = [0, 24], sizes = [8, 8], strides = [1, 1]} : vector<8x96xf32> to vector<8x8xf32>
    %c0_38 = arith.constant 0 : index
    %c3 = arith.constant 3 : index
    %c0_39 = arith.constant 0 : index
    %c0_40 = arith.constant 0 : index
    %41 = vector.load %arg4[%c0_38, %c3, %c0_39, %c0_40] : memref<1x4x8x8xf32, #tpu.memory_space<vmem>>, vector<1x1x8x8xf32>
    %42 = vector.shape_cast %41 : vector<1x1x8x8xf32> to vector<8x8xf32>
    %43 = vector.shape_cast %40 : vector<8x8xf32> to vector<1x1x8x8xf32>
    tpu.vector_store %arg4[%c0_38, %c3, %c0_39, %c0_40], %43 {strides = array<i32>} : memref<1x4x8x8xf32, #tpu.memory_space<vmem>>, vector<1x1x8x8xf32>,
    %44 = vector.extract_strided_slice %3 {offsets = [0, 56], sizes = [8, 8], strides = [1, 1]} : vector<8x96xf32> to vector<8x8xf32>
    %c0_41 = arith.constant 0 : index
    %c3_42 = arith.constant 3 : index
    %c0_43 = arith.constant 0 : index
    %c0_44 = arith.constant 0 : index
    %45 = vector.load %arg5[%c0_41, %c3_42, %c0_43, %c0_44] : memref<1x4x8x8xf32, #tpu.memory_space<vmem>>, vector<1x1x8x8xf32>
    %46 = vector.shape_cast %45 : vector<1x1x8x8xf32> to vector<8x8xf32>
    %47 = vector.shape_cast %44 : vector<8x8xf32> to vector<1x1x8x8xf32>
    tpu.vector_store %arg5[%c0_41, %c3_42, %c0_43, %c0_44], %47 {strides = array<i32>} : memref<1x4x8x8xf32, #tpu.memory_space<vmem>>, vector<1x1x8x8xf32>,
    %48 = vector.extract_strided_slice %3 {offsets = [0, 88], sizes = [8, 8], strides = [1, 1]} : vector<8x96xf32> to vector<8x8xf32>
    %c0_45 = arith.constant 0 : index
    %c3_46 = arith.constant 3 : index
    %c0_47 = arith.constant 0 : index
    %c0_48 = arith.constant 0 : index
    %49 = vector.load %arg6[%c0_45, %c3_46, %c0_47, %c0_48] : memref<1x4x8x8xf32, #tpu.memory_space<vmem>>, vector<1x1x8x8xf32>
    %50 = vector.shape_cast %49 : vector<1x1x8x8xf32> to vector<8x8xf32>
    %51 = vector.shape_cast %48 : vector<8x8xf32> to vector<1x1x8x8xf32>
    tpu.vector_store %arg6[%c0_45, %c3_46, %c0_47, %c0_48], %51 {strides = array<i32>} : memref<1x4x8x8xf32, #tpu.memory_space<vmem>>, vector<1x1x8x8xf32>,
    return
  }
  func.func @transform_0(%arg0: i32, %arg1: i32) -> (i32, i32, i32) {
    %c0_i32 = arith.constant 0 : i32
    %c0_i32_0 = arith.constant 0 : i32
    return %arg0, %arg1, %c0_i32 : i32, i32, i32
  }
  func.func @transform_1(%arg0: i32, %arg1: i32) -> (i32, i32) {
    %c0_i32 = arith.constant 0 : i32
    %c0_i32_0 = arith.constant 0 : i32
    %c0_i32_1 = arith.constant 0 : i32
    return %c0_i32, %c0_i32_0 : i32, i32
  }
  func.func @transform_2(%arg0: i32, %arg1: i32) -> (i32, i32, i32, i32) {
    %c0_i32 = arith.constant 0 : i32
    %c0_i32_0 = arith.constant 0 : i32
    %c0_i32_1 = arith.constant 0 : i32
    return %arg0, %c0_i32, %arg1, %c0_i32_0 : i32, i32, i32, i32
  }
  func.func @transform_3(%arg0: i32, %arg1: i32) -> (i32, i32, i32, i32) {
    %c0_i32 = arith.constant 0 : i32
    %c0_i32_0 = arith.constant 0 : i32
    %c0_i32_1 = arith.constant 0 : i32
    return %arg0, %c0_i32, %arg1, %c0_i32_0 : i32, i32, i32, i32
  }
  func.func @transform_4(%arg0: i32, %arg1: i32) -> (i32, i32, i32, i32) {
    %c0_i32 = arith.constant 0 : i32
    %c0_i32_0 = arith.constant 0 : i32
    %c0_i32_1 = arith.constant 0 : i32
    return %arg0, %c0_i32, %arg1, %c0_i32_0 : i32, i32, i32, i32
  }
}

</mosaic_0001>

<bundles_post_ra>
// kernel: tpu_custom_call.1
= control target key start
LH: loop header
LB: loop body
LE: loop exit
PB: predicated region body
PF: predicated region fallthrough
CT: control target
= control target key end

     0   :  { %s1170_s0 = inlined_call_operand.hbm [shape: f32[2,16,32], index: 0, kind: input, shape index: {}]   ;;  %s1171_s1 = inlined_call_operand.hbm [shape: f32[32,96], index: 1, kind: input, shape index: {}]   ;;  %s1172_s2 = inlined_call_operand.vmem [shape: f32[2,4,16,8], index: 2, kind: output, shape index: {0}]   ;;  %s1173_s3 = inlined_call_operand.vmem [shape: f32[2,4,16,8], index: 3, kind: output, shape index: {1}]   ;;  %s1174_s4 = inlined_call_operand.vmem [shape: f32[2,4,16,8], index: 4, kind: output, shape index: {2}]  }
   0x1   :  { %1176 = sst [smem:[#allocation12_spill]] %s1171_s1 }
   0x2   :  { %1177 = sst [smem:[#allocation13_spill]] %s1173_s3 }
   0x3   :  { %1178 = sst [smem:[#allocation14_spill]] %s1174_s4 }
   0x4   :  { %10 = vsyncpa [#allocation3], 0 }
   0x5   :  { %12 = vsyncpa [#allocation3 + $0x1], 0 }
   0x6   :  { %13 = vsyncpa [#allocation5], 0  ;;  %s964_s15 = smov 0   ;;  %s966_s16 = smov 0  }
   0x7   :  { %s968_s17 = smov 0   ;;  %s970_s18 = smov 0  }
   0x8   :  { %s972_s19 = smov 0   ;;  %s974_s20 = smov 0  }
   0x9   :  { %s976_s21 = smov 0   ;;  %s978_s22 = smov 0  }
   0xa LB: > { %s663_s23 = sadd.s32 4294967295, %s923_s22   ;;  %p665_p0 = scmp.ge.s32.totalorder %s923_s22, 1  ;;  %s923_s22 = sphi %s978_s22, %s19_s22   ;;  %s919_s21 = sphi %s976_s21, %s1195_s21   ;;  %s915_s20 = sphi %s974_s20, %s1194_s20   ;;  %s911_s19 = sphi %s972_s19, %s1193_s19   ;;  %s907_s18 = sphi %s970_s18, %s1192_s18   ;;  %s903_s17 = sphi %s968_s17, %s1191_s17   ;;  %s899_s16 = sphi %s966_s16, %s1190_s16   ;;  %s895_s15 = sphi %s964_s15, %s1189_s15  }
   0xb   : > { %p1006_p1 = scmp.eq.s32.totalorder %s663_s23, 0  ;;  %p169_p2 = scmp.lt.s32.totalorder %s923_s22, 5 }
   0xc   : > { %s1180_s1 = sld [smem:[#allocation12_spill]]  ;;  %s925_s29 = smov [#allocation4]  }
   0xd   : > { %p1014_p3 = pnand %p665_p0, %p169_p2  ;;  %s182_s30 = sshll.u32 %s925_s29, 4  ;;  %s183_s30 = int_to_ptr.vmem [resolvable:$true] %s182_s30 }
   0xe   : > { %s926_s5 = smov 128   ;;  %s927_s6 = smov 8  }
   0xf   : > { %p704_p4 = pneg %p1014_p3  ;;  %s28_s7 = sadd.s32 1, %s915_s20 }
  0x10   : > { %p29_p6 = scmp.ge.s32.totalorder %s28_s7, 2  ;;  %s31_s8 = sadd.s32 1, %s919_s21 }
  0x11   : > { %p705_p5 = pnand %p704_p4, %p1006_p1  ;;  %s40_s9 = sadd.s32 1, %s903_s17 }
  0x12   : > { %s180_s27 = sshll.u32 %s1180_s1, 4  ;;  %p47_p7 = scmp.ne.s32.totalorder %s903_s17, %s899_s16  ;;  %s181_s27 = int_to_ptr.hbm [resolvable:$true] %s180_s27 }
  0x13   : > { %707 = dma.hbm_to_vmem [thread:$0]  (!%p705_p5), %s181_s27, 512, %s183_s30, [#allocation5], %s926_s5, %s926_s5, %s927_s6  }
  0x14   : > { %s1197_s7 = smov (%p29_p6, %s28_s7), 0  ;;  %s1199_s8 = smov (!%p29_p6, %s31_s8), %s919_s21 }
  0x15   : > { %1182 = sst [smem:[#allocation11_spill]] %s1197_s7  ;;  %s36_s10 = ssub.s32 %s915_s20, %s1197_s7 }
  0x16   : > { %p48_p8 = scmp.eq.s32.totalorder %s923_s22, 0  ;;  %p33_p9 = scmp.ge.s32.totalorder %s1199_s8, 2 }
  0x17   : > { %p53_p10 = scmp.ne.s32.totalorder %s899_s16, %s895_s15  ;;  %p100_p12 = scmp.eq.s32.totalorder %s663_s23, 3 }
  0x18   : > { %p1035_p11 = por %p48_p8, %p47_p7  ;;  %s1201_s8 = smov (%p33_p9, %s1199_s8), 0 }
  0x19   : > { %p1043_p13 = por %p1006_p1, %p53_p10  ;;  %p1047_p0 = por %p100_p12, %p47_p7 }
  0x1a   : > { %s35_s14 = ssub.s32 %s919_s21, %s1201_s8  ;;  %p713_p2 = scmp.lt.s32.totalorder %s923_s22, 4 }
  0x1b   : > { %s37_s15 = sor.u32 %s36_s10, %s35_s14  ;;  %s196_s25 = sand.u32 1, %s903_s17  }
  0x1c   : > { %p38_p4 = scmp.eq.s32.totalorder %s37_s15, 0  ;;  %s668_s23 = sshll.u32 %s196_s25, 3 }
  0x1d   : > { %s669_s26 = sshll.u32 %s919_s21, 1  ;;  %s200_s5 = scalar_lea.vmem [#allocation2], %s668_s23 }
  0x1e   : > { %s1057_s27 = scalar_select %p38_p4, %s903_s17, %s40_s9  }
  0x1f   : > { %s204_s29 = sadd.s32 %s915_s20, %s669_s26  ;;  %s210_s6 = sshll.u32 %s200_s5, 4  ;;  %s211_s6 = int_to_ptr.vmem [resolvable:$true] %s210_s6 }
  0x20   : > { %s670_s30 = sshll.u32 %s204_s29, 3  ;;  %p709_p5 = pnand %p713_p2, %p1035_p11 }
  0x21   : > { %s206_s4 = scalar_lea.hbm %s1170_s0, %s670_s30  ;;  %s197_s10 = scalar_lea.sflag [#allocation3], %s196_s25 }
  0x22   : > { %s208_s3 = sshll.u32 %s206_s4, 4  ;;  %219 = sbr.rel (%p1014_p3) target bundleno = 341 (0x155), region = 28  ;;  %s209_s3 = int_to_ptr.hbm [resolvable:$true] %s208_s3 }
  0x23   : > { %711 = dma.hbm_to_vmem [thread:$0]  (!%p709_p5), %s209_s3, 128, %s211_s6, %s197_s10  }
  0x24   : > { %s221_s9 = sand.u32 (!%p1014_p3), 1, %s899_s16  }
  0x25   : > { %s672_s14 = sshll.u32 (!%p1014_p3), %s221_s9, 3  ;;  %s222_s15 = scalar_lea.sflag (!%p1014_p3), [#allocation3], %s221_s9 }
  0x26   : > { %s225_s23 = scalar_lea.vmem (!%p1014_p3), [#allocation2], %s672_s14 }
  0x27   : > { %886 = dma.done.wait (%p1043_p13), %s222_s15, 128  }
  0x28   : > { %888 = vsyncadd (%p1043_p13), %s222_s15, 4294967168 }
  0x29   : > { %890 = dma.done.wait (%p1006_p1), [#allocation5], 512  }
  0x2a   : > { %892 = vsyncadd (%p1006_p1), [#allocation5], 4294966784  ;;  %v267_v0 = vld [vmem:[#allocation4 + $0x18] sm:$0xff]  ;;  %v266_v1 = vld [vmem:[#allocation4 + $0x10] sm:$0xff]  ;;  %vm268_vm0 = vcmask 261120   ;;  %s1078_s1 = sshll.u32 %s221_s9, 5 }
  0x2b   : > { %284 = vmatpush.msra.mxu0 %v267_v0  ;;  %v265_v2 = vld [vmem:[#allocation4 + $0x8] sm:$0xff]  ;;  %v264_v3 = vld [vmem:[#allocation4] sm:$0xff]  ;;  %v263_v4 = vld [vmem:[%s225_s23] sm:$0xff]  ;;  %vm292_vm1 = vcmask 64512   ;;  %s928_s3 = smov 56   ;;  %s929_s4 = smov 120  }
  0x2c   : > { %s1081_s24 = scalar_lea.vmem [#allocation6], %s1078_s1  ;;  %s930_s28 = smov 96  }
  0x2d   : > { %285 = vmatpush.msra.mxu0 %v266_v1  ;;  %s931_s7 = smov 112   ;;  %s932_s11 = smov 88  }
  0x2e   : > { %s933_s12 = smov 64   ;;  %s934_s25 = smov 104  }
  0x2f   : > { %286 = vmatpush.msra.mxu0 %v265_v2  ;;  %s935_s26 = smov 48   ;;  %s936_s29 = smov 80  }
  0x30   : > { %s937_s30 = smov 40   ;;  %s938_s5 = smov 72  }
  0x31   : > { %287 = vmatpush.msra.mxu0 %v264_v3  ;;  %s1086_s6 = scalar_lea.vmem [#allocation8], %s1078_s1  ;;  %s1097_s10 = scalar_lea.vmem [#allocation7], %s1078_s1 }
  0x32   : > { %677 = vmatmul.msk.f32.vlgmr.msra.gmra.mxu0 %vm268_vm0, %v263_v4  ;;  %s690_s9 = sshll.u32 (%p1047_p0), %s911_s19, 3 }
  0x33   : > { %s364_s14 = sadd.s32 (%p1047_p0), %s907_s18, %s690_s9 }
  0x34   : > { %s691_s15 = sshll.u32 (%p1047_p0), %s364_s14, 3 }
  0xaf   : > { %v289_v5 = vpop.f32.mrf.mxu0 }
  0xb0   : > { %313 = vrot.lane.b32.xlu2 %v289_v5, %s928_s3  ;;  %303 = vrot.lane.b32.xlu1 %v289_v5, %s929_s4  ;;  %293 = vst.msk [vmem:[%s1081_s24] sm:$0xff] %vm292_vm1, %v289_v5  ;;  %s366_s3 = scalar_lea.vmem (%p1047_p0), %s1172_s2, %s691_s15 }
  0xb1   : > { %295 = vrot.lane.b32.xlu0 %v289_v5, %s930_s28 }
  0xb7   : > { %v401_v17 = vld [vmem:[%s1081_s24] sm:$0xff] (%p1047_p0) }
  0xb8   : > { %318 = vrot.lane.b32.xlu2 %v289_v5, %s931_s7  ;;  %308 = vrot.lane.b32.xlu1 %v289_v5, %s932_s11  ;;  %402 = vst [vmem:[%s366_s3] sm:$0xff] (%p1047_p0), %v401_v17 }
  0xb9   : > { %299 = vrot.lane.b32.xlu0 %v289_v5, %s933_s12 }
  0xc0   : > { %333 = vrot.lane.b32.xlu2 %v289_v5, %s934_s25  ;;  %328 = vrot.lane.b32.xlu1 %v289_v5, %s935_s26 }
  0xc1   : > { %323 = vrot.lane.b32.xlu0 %v289_v5, %s936_s29 }
  0xc8   : > { %343 = vrot.lane.b32.xlu1 %v289_v5, %s937_s30 }
  0xc9   : > { %338 = vrot.lane.b32.xlu0 %v289_v5, %s938_s5 }
 0x10a   : > { %v314_v6 = vpop.permute.xlu2 %313 }
 0x10b   : > { %680 = vst.msk [vmem:[%s1086_s6 + $0x8] sm:$0xff] %vm292_vm1, %v314_v6 }
 0x112   : > { %v319_v7 = vpop.permute.xlu2 %318 }
 0x113   : > { %681 = vst.msk [vmem:[%s1081_s24 + $0x10] sm:$0xff] %vm292_vm1, %v319_v7 }
 0x11a   : > { %v334_v8 = vpop.permute.xlu2 %333  ;;  %v405_v19 = vld [vmem:[%s1081_s24 + $0x10] sm:$0xff] (%p1047_p0) }
 0x11b   : > { %684 = vst.msk [vmem:[%s1081_s24 + $0x18] sm:$0xff] %vm292_vm1, %v334_v8 }
 0x11c   : > { %406 = vst [vmem:[%s366_s3 + $0x20] sm:$0xff] (%p1047_p0), %v405_v19 }
 0x122   : > { %v304_v9 = vpop.permute.xlu1 %303  ;;  %v407_v20 = vld [vmem:[%s1081_s24 + $0x18] sm:$0xff] (%p1047_p0) }
 0x123   : > { %678 = vst.msk [vmem:[%s1081_s24 + $0x8] sm:$0xff] %vm292_vm1, %v304_v9  ;;  %v296_v10 = vpop.permute.xlu0 %295 }
 0x124   : > { %298 = vst.msk [vmem:[%s1097_s10] sm:$0xff] %vm292_vm1, %v296_v10 }
 0x125   : > { %408 = vst [vmem:[%s366_s3 + $0x30] sm:$0xff] (%p1047_p0), %v407_v20 }
 0x12a   : > { %v309_v11 = vpop.permute.xlu1 %308  ;;  %v403_v18 = vld [vmem:[%s1081_s24 + $0x8] sm:$0xff] (%p1047_p0) }
 0x12b   : > { %679 = vst.msk [vmem:[%s1097_s10 + $0x8] sm:$0xff] %vm292_vm1, %v309_v11  ;;  %v300_v12 = vpop.permute.xlu0 %299 }
 0x12c   : > { %302 = vst.msk [vmem:[%s1086_s6] sm:$0xff] %vm292_vm1, %v300_v12 }
 0x12d   : > { %404 = vst [vmem:[%s366_s3 + $0x10] sm:$0xff] (%p1047_p0), %v403_v18 }
 0x132   : > { %v329_v13 = vpop.permute.xlu1 %328 }
 0x133   : > { %683 = vst.msk [vmem:[%s1086_s6 + $0x10] sm:$0xff] %vm292_vm1, %v329_v13  ;;  %v324_v14 = vpop.permute.xlu0 %323 }
 0x134   : > { %682 = vst.msk [vmem:[%s1097_s10 + $0x10] sm:$0xff] %vm292_vm1, %v324_v14 }
 0x138   : > { %362 = sbr.rel (!%p1047_p0) target bundleno = 317 (0x13d), region = 40 }
 0x13a   : > { %v344_v15 = vpop.permute.xlu1 %343 }
 0x13b   : > { %686 = vst.msk [vmem:[%s1086_s6 + $0x18] sm:$0xff] %vm292_vm1, %v344_v15  ;;  %v339_v16 = vpop.permute.xlu0 %338 }
 0x13c   : > { %685 = vst.msk [vmem:[%s1097_s10 + $0x18] sm:$0xff] %vm292_vm1, %v339_v16 }
 0x13d PF: > { %414 = sbr.rel (!%p1047_p0) target bundleno = 329 (0x149), region = 78  ;;  %s692_s4 = sshll.u32 (%p1047_p0), %s911_s19, 3  ;;  %v453_v21 = vld [vmem:[%s1097_s10] sm:$0xff] (%p1047_p0)  ;;  %v455_v22 = vld [vmem:[%s1097_s10 + $0x8] sm:$0xff] (%p1047_p0)  ;;  %v457_v23 = vld [vmem:[%s1097_s10 + $0x10] sm:$0xff] (%p1047_p0) }
 0x13e   : > { %s416_s28 = sadd.s32 (%p1047_p0), %s907_s18, %s692_s4  ;;  %s1186_s12 = sld [smem:[#allocation13_spill]] (%p1047_p0) }
 0x13f   : > { %s693_s7 = sshll.u32 (%p1047_p0), %s416_s28, 3 }
 0x143   : > { %v459_v24 = vld [vmem:[%s1097_s10 + $0x18] sm:$0xff] }
 0x144   : > { %s418_s25 = scalar_lea.vmem %s1186_s12, %s693_s7 }
 0x145   : > { %454 = vst [vmem:[%s418_s25] sm:$0xff] %v453_v21 }
 0x146   : > { %456 = vst [vmem:[%s418_s25 + $0x10] sm:$0xff] %v455_v22 }
 0x147   : > { %458 = vst [vmem:[%s418_s25 + $0x20] sm:$0xff] %v457_v23 }
 0x148   : > { %460 = vst [vmem:[%s418_s25 + $0x30] sm:$0xff] %v459_v24 }
 0x149 PF: > { %466 = sbr.rel (!%p1047_p0) target bundleno = 341 (0x155), region = 116  ;;  %s694_s26 = sshll.u32 (%p1047_p0), %s911_s19, 3  ;;  %v505_v25 = vld [vmem:[%s1086_s6] sm:$0xff] (%p1047_p0)  ;;  %v507_v26 = vld [vmem:[%s1086_s6 + $0x8] sm:$0xff] (%p1047_p0)  ;;  %v509_v27 = vld [vmem:[%s1086_s6 + $0x10] sm:$0xff] (%p1047_p0) }
 0x14a   : > { %s468_s29 = sadd.s32 (%p1047_p0), %s907_s18, %s694_s26  ;;  %s1187_s9 = sld [smem:[#allocation14_spill]] (%p1047_p0)  ;;  %v511_v28 = vld [vmem:[%s1086_s6 + $0x18] sm:$0xff] (%p1047_p0) }
 0x14b   : > { %s695_s30 = sshll.u32 (%p1047_p0), %s468_s29, 3 }
 0x150   : > { %s470_s14 = scalar_lea.vmem %s1187_s9, %s695_s30 }
 0x151   : > { %506 = vst [vmem:[%s470_s14] sm:$0xff] %v505_v25 }
 0x152   : > { %508 = vst [vmem:[%s470_s14 + $0x10] sm:$0xff] %v507_v26 }
 0x153   : > { %510 = vst [vmem:[%s470_s14 + $0x20] sm:$0xff] %v509_v27 }
 0x154   : > { %512 = vst [vmem:[%s470_s14 + $0x30] sm:$0xff] %v511_v28 }
 0x155 PF: > { %s19_s22 = sadd.s32 1, %s923_s22   ;;  %s1188_s13 = sld [smem:[#allocation11_spill]] }
 0x156   : > { %p16_p1 = scmp.ge.s32.totalorder %s19_s22, 6   ;;  %s1189_s15 = smov %s899_s16 }
 0x157   : > { %s1190_s16 = smov %s903_s17  ;;  %s1191_s17 = smov %s1057_s27 }
 0x158   : > { %s1192_s18 = smov %s915_s20  ;;  %s1193_s19 = smov %s919_s21 }
 0x159   : > { %s1195_s21 = smov %s1201_s8  ;;  %18 = sbr.rel (!%p16_p1) target bundleno = 10 (0xa), region = 219 }
 0x15b   : > { %s1194_s20 = smov %s1188_s13 }
 0x15e   :  { %542 = vsyncpa [#allocation3], 1 }
 0x15f   :  { %544 = vsyncpa [#allocation3 + $0x1], 1 }
 0x160   :  { %545 = vsyncpa [#allocation5], 1 }

</bundles_post_ra>
